<compile_context>
chip_gen: v6e
topology: v6e:2x2x1
jax: 0.10.0
libtpu: 0.0.40
codegen_flags: <defaults>
</compile_context>

<pallas_src>
import jax
import jax.numpy as jnp
from jax import lax
from jax.experimental import pallas as pl
from jax.experimental.pallas import tpu as pltpu


_HIGHEST = lax.Precision.HIGHEST


# --------------------------------------------------------------------------
# In-kernel helpers
# --------------------------------------------------------------------------
def _softmax_rows(s):
    """Exact, numerically stable softmax over the last (lane) axis."""
    m = jnp.max(s, axis=-1, keepdims=True)
    e = jnp.exp(s - m)
    return e / jnp.sum(e, axis=-1, keepdims=True)


def _stack_cols(col_fn, n_cols, n_rows):
    """scores[:, l] = col_fn(l) for l in range(n_cols)  ->  (n_rows, n_cols).

    Uses a 2-D iota + select accumulation instead of a lane-dim concatenate /
    transpose, so the lowering only needs elementwise ops.  n_cols is the
    (small) source-sentence length, so the static unroll is cheap.
    """
    lane = lax.broadcasted_iota(jnp.int32, (1, n_cols), 1)        # (1, L)
    scores = jnp.zeros((n_rows, n_cols), jnp.float32)
    for l in range(n_cols):
        scores = jnp.where(lane == l, col_fn(l), scores)          # col broadcasts
    return scores


def _scores_against(enc_ref, w_bh):
    """scores[b, l] = sum_h w_bh[b, h] * enc[l, b, h]  ->  (TB, L) float32.

    enc_ref holds the (L, TB, H) block in its native seq-major layout; each
    column is a dense (TB, H) VPU multiply + lane reduce (f32 accumulation).
    """
    L = enc_ref.shape[0]

    def col(l):
        e_l = enc_ref[l].astype(jnp.float32)                      # (TB, H)
        return jnp.sum(w_bh * e_l, axis=-1, keepdims=True)        # (TB, 1)

    return _stack_cols(col, L, w_bh.shape[0])


# --------------------------------------------------------------------------
# Kernels (one grid step == one tile of TB batch elements)
# --------------------------------------------------------------------------
def _dot_kernel(h_ref, enc_ref, out_ref):
    h = h_ref[0].astype(jnp.float32)                              # (TB, H)
    out_ref[:, 0, :] = _softmax_rows(_scores_against(enc_ref, h))


def _general_kernel(h_ref, enc_ref, w_ref, b_ref, out_ref):
    # score[b, l] = h[b] . (W @ enc[l, b] + bias)
    #             = (h[b] @ W) . enc[l, b] + h[b] . bias
    # -> the nn.Linear collapses to ONE (TB, H) @ (H, H) MXU matmul.
    h = h_ref[0]                                                  # (TB, H)
    g = jnp.dot(h, w_ref[...], preferred_element_type=jnp.float32,
                precision=_HIGHEST)                               # (TB, H) f32
    h32 = h.astype(jnp.float32)
    c = jnp.sum(h32 * b_ref[...], axis=-1, keepdims=True)         # (TB, 1)
    scores = _scores_against(enc_ref, g) + c
    out_ref[:, 0, :] = _softmax_rows(scores)


def _concat_kernel(h_ref, enc_ref, w1t_ref, w2t_ref, b_ref, v_ref, out_ref):
    # cat([h, enc]) @ W.T == h @ W[:, :H].T + enc @ W[:, H:].T  (split in wrapper)
    h = h_ref[0]                                                  # (TB, H)
    hp = jnp.dot(h, w1t_ref[...], preferred_element_type=jnp.float32,
                 precision=_HIGHEST) + b_ref[...]                 # (TB, H) f32
    v32 = v_ref[...]                                              # (1, H) f32
    L = enc_ref.shape[0]

    def col(l):
        ep = jnp.dot(enc_ref[l], w2t_ref[...],                    # (TB, H) MXU
                     preferred_element_type=jnp.float32, precision=_HIGHEST)
        en = jnp.tanh(hp + ep)                                    # f32, no downcast
        return jnp.sum(v32 * en, axis=-1, keepdims=True)          # (TB, 1)

    scores = _stack_cols(col, L, h.shape[0])
    out_ref[:, 0, :] = _softmax_rows(scores)


# --------------------------------------------------------------------------
# Wrapper
# --------------------------------------------------------------------------
def _choose_batch_tile(B, L, H, itemsize):
    """Batch tile TB: sublane-aligned (or == B), a few MiB of enc per step,
    and >= 2 grid steps for larger batches (v7x megacore)."""
    budget = 4 << 20                            # double-buffered enc block budget
    cap = max(1, budget // max(1, 2 * L * H * itemsize))
    if B >= 16:
        cap = min(cap, B // 2)                  # keep >= 2 grid steps
    if cap >= B:
        return B                                # whole batch in one step
    tb = (min(cap, B) // 8) * 8                 # multiple of 8 dividing B
    while tb >= 8:
        if B % tb == 0:
            return tb
        tb -= 8
    return B                                    # fallback: no aligned divisor


def _vmem_limit_bytes(TB, L, H, n_mats, itemsize):
    blk = (L * TB * H + TB * H) * itemsize + TB * L * 4      # enc + h + out block
    consts = n_mats * H * H * itemsize + 2 * H * 4           # weights + bias/v
    need = 2 * blk + 2 * consts + (4 << 20)                  # worst-case buffering
    # >= 32 MiB (past v5e's 16 MiB scoped default), <= 56 MiB (v7x physical 64).
    return int(min(max(need, 32 << 20), 56 << 20))


def _cost_estimate(method, B, L, H, itemsize):
    out_bytes = B * L * 4
    if method == "dot":
        flops = 2 * B * L * H
        trans = B * L
        in_bytes = (B * H + L * B * H) * itemsize
    elif method == "general":
        flops = 2 * B * H * H + 2 * B * L * H + 2 * B * H
        trans = B * L
        in_bytes = (B * H + L * B * H + H * H) * itemsize + H * 4
    else:  # concat
        flops = 2 * B * H * H + 2 * L * B * H * H + 2 * L * B * H
        trans = B * L * H + B * L
        in_bytes = (B * H + L * B * H + 2 * H * H) * itemsize + 2 * H * 4
    return pl.CostEstimate(flops=flops, transcendentals=trans,
                           bytes_accessed=in_bytes + out_bytes)


def attn_forward(method, hidden, encoder_outputs, params,
                 compute_dtype=jnp.bfloat16):
    """hidden: (1, B, H), encoder_outputs: (L, B, H) -> (B, 1, L) float32.

    compute_dtype: dtype for hidden / encoder_outputs / weights on the DMA +
    MXU path (accumulation, tanh and softmax stay float32).  Defaults to
    bfloat16; pass jnp.float32 for exact parity with the PyTorch reference.
    The casts are no-ops if the caller already stores data in compute_dtype.
    """
    if method not in ("dot", "general", "concat"):
        raise ValueError(method, "is not an appropriate attention method.")
    L, B, H = encoder_outputs.shape
    cdt = jnp.dtype(compute_dtype) if compute_dtype is not None \
        else jnp.dtype(encoder_outputs.dtype)
    itemsize = cdt.itemsize

    # encoder_outputs stays in its native (L, B, H) layout: the per-batch
    # slice is taken by the BlockSpec / DMA (no wrapper-side transpose).
    h = hidden.astype(cdt)                      # (1, B, H)
    enc = encoder_outputs.astype(cdt)           # (L, B, H)

    TB = _choose_batch_tile(B, L, H, itemsize)
    grid = (B // TB,)

    h_spec = pl.BlockSpec((1, TB, H), lambda b: (0, b, 0))
    enc_spec = pl.BlockSpec((L, TB, H), lambda b: (0, b, 0))
    out_spec = pl.BlockSpec((TB, 1, L), lambda b: (b, 0, 0))   # lane-dense writeback

    if method == "dot":
        kernel, extra, extra_shapes, n_mats = _dot_kernel, (), [], 0
    elif method == "general":
        w = params["attn_w"].astype(cdt)                        # (H, H), used as h @ W
        b = params["attn_b"].reshape(1, H).astype(jnp.float32)
        kernel, extra = _general_kernel, (w, b)
        extra_shapes, n_mats = [(H, H), (1, H)], 1
    else:  # concat
        w = params["attn_w"]                                    # (H, 2H)
        w1t = jnp.transpose(w[:, :H]).astype(cdt)               # (H, H)
        w2t = jnp.transpose(w[:, H:]).astype(cdt)               # (H, H)
        b = params["attn_b"].reshape(1, H).astype(jnp.float32)
        v = params["v"].reshape(1, H).astype(jnp.float32)
        kernel, extra = _concat_kernel, (w1t, w2t, b, v)
        extra_shapes, n_mats = [(H, H), (H, H), (1, H), (1, H)], 2

    compiler_params = pltpu.CompilerParams(
        dimension_semantics=("parallel",),      # batch tiles across v7x's 2 TCs
        vmem_limit_bytes=_vmem_limit_bytes(TB, L, H, n_mats, itemsize))
    cost = _cost_estimate(method, B, L, H, itemsize)

    def call(single_buffer_consts):
        def const_spec(shape):
            index_map = lambda b: (0,) * len(shape)
            if single_buffer_consts:
                # Loop-invariant weights / bias / v: keep one VMEM copy
                # instead of the default double-buffering.
                return pl.BlockSpec(shape, index_map,
                                    pipeline_mode=pl.Buffered(1))
            return pl.BlockSpec(shape, index_map)

        in_specs = [h_spec, enc_spec] + [const_spec(s) for s in extra_shapes]
        return pl.pallas_call(
            kernel,
            out_shape=jax.ShapeDtypeStruct((B, 1, L), jnp.float32),
            grid=grid,
            in_specs=in_specs,
            out_specs=out_spec,
            compiler_params=compiler_params,
            cost_estimate=cost,
        )(h, enc, *extra)

    try:
        return call(single_buffer_consts=True)
    except Exception:
        # Fallback if pipeline_mode=pl.Buffered(1) is rejected by this jax.
        return call(single_buffer_consts=False)


# --------------------------------------------------------------------------
# Pure-JAX reference (mirrors the PyTorch module exactly)
# --------------------------------------------------------------------------
def attn_reference(method, hidden, encoder_outputs, params):
    P = _HIGHEST
    if method == "dot":
        scores = jnp.sum(hidden * encoder_outputs, axis=2)                  # (L, B)
    elif method == "general":
        energy = jnp.einsum("lbk,jk->lbj", encoder_outputs, params["attn_w"],
                            precision=P) + params["attn_b"]
        scores = jnp.sum(hidden * energy, axis=2)
    else:  # concat
        L = encoder_outputs.shape[0]
        h_exp = jnp.broadcast_to(hidden, (L,) + hidden.shape[1:])
        cat = jnp.concatenate([h_exp, encoder_outputs], axis=2)
        energy = jnp.tanh(jnp.einsum("lbk,jk->lbj", cat, params["attn_w"],
                                     precision=P) + params["attn_b"])
        scores = jnp.sum(params["v"] * energy, axis=2)
    return jax.nn.softmax(scores.T, axis=1)[:, None, :]                     # (B, 1, L)


if __name__ == "__main__":
    B, L, H = 2, 8, 32
    key = jax.random.PRNGKey(0)
    k_h, k_e, k_wg, k_bg, k_wc, k_bc, k_v = jax.random.split(key, 7)

    hidden = jax.random.normal(k_h, (1, B, H), dtype=jnp.float32)
    encoder_outputs = jax.random.normal(k_e, (L, B, H), dtype=jnp.float32)

    params_by_method = {
        "dot": {},
        "general": {
            "attn_w": jax.random.normal(k_wg, (H, H), dtype=jnp.float32) * 0.1,
            "attn_b": jax.random.normal(k_bg, (H,), dtype=jnp.float32) * 0.1,
        },
        "concat": {
            "attn_w": jax.random.normal(k_wc, (H, 2 * H), dtype=jnp.float32) * 0.1,
            "attn_b": jax.random.normal(k_bc, (H,), dtype=jnp.float32) * 0.1,
            "v": jax.random.normal(k_v, (H,), dtype=jnp.float32),
        },
    }

    def bf16_round(x):
        return x.astype(jnp.bfloat16).astype(jnp.float32)

    ok = True
    for method in ("dot", "general", "concat"):
        params = params_by_method[method]
        ref = attn_reference(method, hidden, encoder_outputs, params)

        # float32 compute path: tight parity with the reference.
        out32 = jax.block_until_ready(
            attn_forward(method, hidden, encoder_outputs, params,
                         compute_dtype=jnp.float32))
        ok &= out32.shape == (B, 1, L)
        ok &= bool(jnp.allclose(out32, ref, atol=1e-4, rtol=1e-4))
        ok &= bool(jnp.allclose(jnp.sum(out32, axis=-1), 1.0, atol=1e-5))

        # default bfloat16 path: compare against the reference run on the same
        # bf16-rounded inputs/weights (the kernel itself accumulates in f32,
        # so only the intended input rounding differs).
        out16 = jax.block_until_ready(
            attn_forward(method, hidden, encoder_outputs, params))
        p16 = dict(params)
        if "attn_w" in p16:
            p16["attn_w"] = bf16_round(p16["attn_w"])
        ref16 = attn_reference(method, bf16_round(hidden),
                               bf16_round(encoder_outputs), p16)
        ok &= out16.shape == (B, 1, L)
        ok &= bool(jnp.allclose(out16, ref16, atol=5e-4, rtol=5e-3))
        ok &= bool(jnp.allclose(jnp.sum(out16, axis=-1), 1.0, atol=1e-4))

    print("KERNEL_OK" if ok else "KERNEL_MISMATCH")
</pallas_src>

<mosaic_0001>
module attributes {stable_mosaic.version = 11 : i64} {
  func.func @_dot_kernel(%arg0: i32, %arg1: memref<1x2x32xf32, #tpu.memory_space<vmem>>, %arg2: memref<8x2x32xf32, #tpu.memory_space<vmem>>, %arg3: memref<2x1x8xf32, #tpu.memory_space<vmem>>) attributes {dimension_semantics = [#tpu.dimension_semantics<parallel>], iteration_bounds = array<i64: 1>, scalar_prefetch = 0 : i64, scratch_operands = 0 : i64, tpu.core_type = #tpu.core_type<tc>, window_params = [{transform_indices = @transform_0, window_bounds = array<i64: 1, 2, 32>}, {transform_indices = @transform_1, window_bounds = array<i64: 8, 2, 32>}, {transform_indices = @transform_2, window_bounds = array<i64: 2, 1, 8>}]} {
    %c0 = arith.constant 0 : index
    %c0_0 = arith.constant 0 : index
    %c0_1 = arith.constant 0 : index
    %0 = vector.load %arg1[%c0, %c0_0, %c0_1] : memref<1x2x32xf32, #tpu.memory_space<vmem>>, vector<1x2x32xf32>
    %1 = vector.shape_cast %0 : vector<1x2x32xf32> to vector<2x32xf32>
    %2 = tpu.iota {dimensions = array<i32: 1>} : vector<1x8xi32>
    %cst = arith.constant 0.000000e+00 : f32
    %3 = vector.broadcast %cst : f32 to vector<2x8xf32>
    %c0_i32 = arith.constant 0 : i32
    %4 = vector.broadcast %c0_i32 : i32 to vector<1x8xi32>
    %5 = arith.cmpi eq, %2, %4 : vector<1x8xi32>
    %c0_2 = arith.constant 0 : index
    %c0_3 = arith.constant 0 : index
    %c0_4 = arith.constant 0 : index
    %6 = vector.load %arg2[%c0_2, %c0_3, %c0_4] : memref<8x2x32xf32, #tpu.memory_space<vmem>>, vector<1x2x32xf32>
    %7 = vector.shape_cast %6 : vector<1x2x32xf32> to vector<2x32xf32>
    %8 = arith.mulf %1, %7 : vector<2x32xf32>
    %cst_5 = arith.constant dense<0.000000e+00> : vector<2xf32>
    %9 = vector.multi_reduction <add>, %8, %cst_5 [1] : vector<2x32xf32> to vector<2xf32>
    %10 = vector.shape_cast %9 : vector<2xf32> to vector<2x1xf32>
    %11 = vector.shape_cast %5 : vector<1x8xi1> to vector<1x8xi1>
    %12 = vector.broadcast %11 : vector<1x8xi1> to vector<2x8xi1>
    %13 = vector.shape_cast %10 : vector<2x1xf32> to vector<2x1xf32>
    %14 = vector.broadcast %13 : vector<2x1xf32> to vector<2x8xf32>
    %15 = arith.select %12, %14, %3 : vector<2x8xi1>, vector<2x8xf32>
    %c1_i32 = arith.constant 1 : i32
    %16 = vector.broadcast %c1_i32 : i32 to vector<1x8xi32>
    %17 = arith.cmpi eq, %2, %16 : vector<1x8xi32>
    %c1 = arith.constant 1 : index
    %c0_6 = arith.constant 0 : index
    %c0_7 = arith.constant 0 : index
    %18 = vector.load %arg2[%c1, %c0_6, %c0_7] : memref<8x2x32xf32, #tpu.memory_space<vmem>>, vector<1x2x32xf32>
    %19 = vector.shape_cast %18 : vector<1x2x32xf32> to vector<2x32xf32>
    %20 = arith.mulf %1, %19 : vector<2x32xf32>
    %cst_8 = arith.constant dense<0.000000e+00> : vector<2xf32>
    %21 = vector.multi_reduction <add>, %20, %cst_8 [1] : vector<2x32xf32> to vector<2xf32>
    %22 = vector.shape_cast %21 : vector<2xf32> to vector<2x1xf32>
    %23 = vector.shape_cast %17 : vector<1x8xi1> to vector<1x8xi1>
    %24 = vector.broadcast %23 : vector<1x8xi1> to vector<2x8xi1>
    %25 = vector.shape_cast %22 : vector<2x1xf32> to vector<2x1xf32>
    %26 = vector.broadcast %25 : vector<2x1xf32> to vector<2x8xf32>
    %27 = arith.select %24, %26, %15 : vector<2x8xi1>, vector<2x8xf32>
    %c2_i32 = arith.constant 2 : i32
    %28 = vector.broadcast %c2_i32 : i32 to vector<1x8xi32>
    %29 = arith.cmpi eq, %2, %28 : vector<1x8xi32>
    %c2 = arith.constant 2 : index
    %c0_9 = arith.constant 0 : index
    %c0_10 = arith.constant 0 : index
    %30 = vector.load %arg2[%c2, %c0_9, %c0_10] : memref<8x2x32xf32, #tpu.memory_space<vmem>>, vector<1x2x32xf32>
    %31 = vector.shape_cast %30 : vector<1x2x32xf32> to vector<2x32xf32>
    %32 = arith.mulf %1, %31 : vector<2x32xf32>
    %cst_11 = arith.constant dense<0.000000e+00> : vector<2xf32>
    %33 = vector.multi_reduction <add>, %32, %cst_11 [1] : vector<2x32xf32> to vector<2xf32>
    %34 = vector.shape_cast %33 : vector<2xf32> to vector<2x1xf32>
    %35 = vector.shape_cast %29 : vector<1x8xi1> to vector<1x8xi1>
    %36 = vector.broadcast %35 : vector<1x8xi1> to vector<2x8xi1>
    %37 = vector.shape_cast %34 : vector<2x1xf32> to vector<2x1xf32>
    %38 = vector.broadcast %37 : vector<2x1xf32> to vector<2x8xf32>
    %39 = arith.select %36, %38, %27 : vector<2x8xi1>, vector<2x8xf32>
    %c3_i32 = arith.constant 3 : i32
    %40 = vector.broadcast %c3_i32 : i32 to vector<1x8xi32>
    %41 = arith.cmpi eq, %2, %40 : vector<1x8xi32>
    %c3 = arith.constant 3 : index
    %c0_12 = arith.constant 0 : index
    %c0_13 = arith.constant 0 : index
    %42 = vector.load %arg2[%c3, %c0_12, %c0_13] : memref<8x2x32xf32, #tpu.memory_space<vmem>>, vector<1x2x32xf32>
    %43 = vector.shape_cast %42 : vector<1x2x32xf32> to vector<2x32xf32>
    %44 = arith.mulf %1, %43 : vector<2x32xf32>
    %cst_14 = arith.constant dense<0.000000e+00> : vector<2xf32>
    %45 = vector.multi_reduction <add>, %44, %cst_14 [1] : vector<2x32xf32> to vector<2xf32>
    %46 = vector.shape_cast %45 : vector<2xf32> to vector<2x1xf32>
    %47 = vector.shape_cast %41 : vector<1x8xi1> to vector<1x8xi1>
    %48 = vector.broadcast %47 : vector<1x8xi1> to vector<2x8xi1>
    %49 = vector.shape_cast %46 : vector<2x1xf32> to vector<2x1xf32>
    %50 = vector.broadcast %49 : vector<2x1xf32> to vector<2x8xf32>
    %51 = arith.select %48, %50, %39 : vector<2x8xi1>, vector<2x8xf32>
    %c4_i32 = arith.constant 4 : i32
    %52 = vector.broadcast %c4_i32 : i32 to vector<1x8xi32>
    %53 = arith.cmpi eq, %2, %52 : vector<1x8xi32>
    %c4 = arith.constant 4 : index
    %c0_15 = arith.constant 0 : index
    %c0_16 = arith.constant 0 : index
    %54 = vector.load %arg2[%c4, %c0_15, %c0_16] : memref<8x2x32xf32, #tpu.memory_space<vmem>>, vector<1x2x32xf32>
    %55 = vector.shape_cast %54 : vector<1x2x32xf32> to vector<2x32xf32>
    %56 = arith.mulf %1, %55 : vector<2x32xf32>
    %cst_17 = arith.constant dense<0.000000e+00> : vector<2xf32>
    %57 = vector.multi_reduction <add>, %56, %cst_17 [1] : vector<2x32xf32> to vector<2xf32>
    %58 = vector.shape_cast %57 : vector<2xf32> to vector<2x1xf32>
    %59 = vector.shape_cast %53 : vector<1x8xi1> to vector<1x8xi1>
    %60 = vector.broadcast %59 : vector<1x8xi1> to vector<2x8xi1>
    %61 = vector.shape_cast %58 : vector<2x1xf32> to vector<2x1xf32>
    %62 = vector.broadcast %61 : vector<2x1xf32> to vector<2x8xf32>
    %63 = arith.select %60, %62, %51 : vector<2x8xi1>, vector<2x8xf32>
    %c5_i32 = arith.constant 5 : i32
    %64 = vector.broadcast %c5_i32 : i32 to vector<1x8xi32>
    %65 = arith.cmpi eq, %2, %64 : vector<1x8xi32>
    %c5 = arith.constant 5 : index
    %c0_18 = arith.constant 0 : index
    %c0_19 = arith.constant 0 : index
    %66 = vector.load %arg2[%c5, %c0_18, %c0_19] : memref<8x2x32xf32, #tpu.memory_space<vmem>>, vector<1x2x32xf32>
    %67 = vector.shape_cast %66 : vector<1x2x32xf32> to vector<2x32xf32>
    %68 = arith.mulf %1, %67 : vector<2x32xf32>
    %cst_20 = arith.constant dense<0.000000e+00> : vector<2xf32>
    %69 = vector.multi_reduction <add>, %68, %cst_20 [1] : vector<2x32xf32> to vector<2xf32>
    %70 = vector.shape_cast %69 : vector<2xf32> to vector<2x1xf32>
    %71 = vector.shape_cast %65 : vector<1x8xi1> to vector<1x8xi1>
    %72 = vector.broadcast %71 : vector<1x8xi1> to vector<2x8xi1>
    %73 = vector.shape_cast %70 : vector<2x1xf32> to vector<2x1xf32>
    %74 = vector.broadcast %73 : vector<2x1xf32> to vector<2x8xf32>
    %75 = arith.select %72, %74, %63 : vector<2x8xi1>, vector<2x8xf32>
    %c6_i32 = arith.constant 6 : i32
    %76 = vector.broadcast %c6_i32 : i32 to vector<1x8xi32>
    %77 = arith.cmpi eq, %2, %76 : vector<1x8xi32>
    %c6 = arith.constant 6 : index
    %c0_21 = arith.constant 0 : index
    %c0_22 = arith.constant 0 : index
    %78 = vector.load %arg2[%c6, %c0_21, %c0_22] : memref<8x2x32xf32, #tpu.memory_space<vmem>>, vector<1x2x32xf32>
    %79 = vector.shape_cast %78 : vector<1x2x32xf32> to vector<2x32xf32>
    %80 = arith.mulf %1, %79 : vector<2x32xf32>
    %cst_23 = arith.constant dense<0.000000e+00> : vector<2xf32>
    %81 = vector.multi_reduction <add>, %80, %cst_23 [1] : vector<2x32xf32> to vector<2xf32>
    %82 = vector.shape_cast %81 : vector<2xf32> to vector<2x1xf32>
    %83 = vector.shape_cast %77 : vector<1x8xi1> to vector<1x8xi1>
    %84 = vector.broadcast %83 : vector<1x8xi1> to vector<2x8xi1>
    %85 = vector.shape_cast %82 : vector<2x1xf32> to vector<2x1xf32>
    %86 = vector.broadcast %85 : vector<2x1xf32> to vector<2x8xf32>
    %87 = arith.select %84, %86, %75 : vector<2x8xi1>, vector<2x8xf32>
    %c7_i32 = arith.constant 7 : i32
    %88 = vector.broadcast %c7_i32 : i32 to vector<1x8xi32>
    %89 = arith.cmpi eq, %2, %88 : vector<1x8xi32>
    %c7 = arith.constant 7 : index
    %c0_24 = arith.constant 0 : index
    %c0_25 = arith.constant 0 : index
    %90 = vector.load %arg2[%c7, %c0_24, %c0_25] : memref<8x2x32xf32, #tpu.memory_space<vmem>>, vector<1x2x32xf32>
    %91 = vector.shape_cast %90 : vector<1x2x32xf32> to vector<2x32xf32>
    %92 = arith.mulf %1, %91 : vector<2x32xf32>
    %cst_26 = arith.constant dense<0.000000e+00> : vector<2xf32>
    %93 = vector.multi_reduction <add>, %92, %cst_26 [1] : vector<2x32xf32> to vector<2xf32>
    %94 = vector.shape_cast %93 : vector<2xf32> to vector<2x1xf32>
    %95 = vector.shape_cast %89 : vector<1x8xi1> to vector<1x8xi1>
    %96 = vector.broadcast %95 : vector<1x8xi1> to vector<2x8xi1>
    %97 = vector.shape_cast %94 : vector<2x1xf32> to vector<2x1xf32>
    %98 = vector.broadcast %97 : vector<2x1xf32> to vector<2x8xf32>
    %99 = arith.select %96, %98, %87 : vector<2x8xi1>, vector<2x8xf32>
    %cst_27 = arith.constant dense<0xFF800000> : vector<2xf32>
    %100 = vector.multi_reduction <maximumf>, %99, %cst_27 [1] : vector<2x8xf32> to vector<2xf32>
    %101 = vector.shape_cast %100 : vector<2xf32> to vector<2x1xf32>
    %102 = vector.broadcast %101 : vector<2x1xf32> to vector<2x8xf32>
    %103 = arith.subf %99, %102 : vector<2x8xf32>
    %104 = math.exp %103 : vector<2x8xf32>
    %cst_28 = arith.constant dense<0.000000e+00> : vector<2xf32>
    %105 = vector.multi_reduction <add>, %104, %cst_28 [1] : vector<2x8xf32> to vector<2xf32>
    %106 = vector.shape_cast %105 : vector<2xf32> to vector<2x1xf32>
    %107 = vector.broadcast %106 : vector<2x1xf32> to vector<2x8xf32>
    %108 = arith.divf %104, %107 : vector<2x8xf32>
    %c0_29 = arith.constant 0 : index
    %c0_30 = arith.constant 0 : index
    %c0_31 = arith.constant 0 : index
    %109 = vector.load %arg3[%c0_29, %c0_30, %c0_31] : memref<2x1x8xf32, #tpu.memory_space<vmem>>, vector<2x1x8xf32>
    %110 = vector.shape_cast %109 : vector<2x1x8xf32> to vector<2x8xf32>
    %111 = vector.shape_cast %108 : vector<2x8xf32> to vector<2x1x8xf32>
    tpu.vector_store %arg3[%c0_29, %c0_30, %c0_31], %111 {strides = array<i32>} : memref<2x1x8xf32, #tpu.memory_space<vmem>>, vector<2x1x8xf32>,
    return
  }
  func.func @transform_0(%arg0: i32) -> (i32, i32, i32) {
    %c0_i32 = arith.constant 0 : i32
    %c0_i32_0 = arith.constant 0 : i32
    %c0_i32_1 = arith.constant 0 : i32
    return %c0_i32, %arg0, %c0_i32_0 : i32, i32, i32
  }
  func.func @transform_1(%arg0: i32) -> (i32, i32, i32) {
    %c0_i32 = arith.constant 0 : i32
    %c0_i32_0 = arith.constant 0 : i32
    %c0_i32_1 = arith.constant 0 : i32
    return %c0_i32, %arg0, %c0_i32_0 : i32, i32, i32
  }
  func.func @transform_2(%arg0: i32) -> (i32, i32, i32) {
    %c0_i32 = arith.constant 0 : i32
    %c0_i32_0 = arith.constant 0 : i32
    %c0_i32_1 = arith.constant 0 : i32
    return %arg0, %c0_i32, %c0_i32_0 : i32, i32, i32
  }
}

module attributes {stable_mosaic.version = 11 : i64} {
  func.func @_dot_kernel(%arg0: i32, %arg1: memref<1x2x32xf32, #tpu.memory_space<vmem>>, %arg2: memref<8x2x32xf32, #tpu.memory_space<vmem>>, %arg3: memref<2x1x8xf32, #tpu.memory_space<vmem>>) attributes {dimension_semantics = [#tpu.dimension_semantics<parallel>], iteration_bounds = array<i64: 1>, scalar_prefetch = 0 : i64, scratch_operands = 0 : i64, tpu.core_type = #tpu.core_type<tc>, window_params = [{transform_indices = @transform_0, window_bounds = array<i64: 1, 2, 32>}, {transform_indices = @transform_1, window_bounds = array<i64: 8, 2, 32>}, {transform_indices = @transform_2, window_bounds = array<i64: 2, 1, 8>}]} {
    %c0 = arith.constant 0 : index
    %c0_0 = arith.constant 0 : index
    %c0_1 = arith.constant 0 : index
    %0 = vector.load %arg1[%c0, %c0_0, %c0_1] : memref<1x2x32xf32, #tpu.memory_space<vmem>>, vector<1x2x32xf32>
    %1 = vector.shape_cast %0 : vector<1x2x32xf32> to vector<2x32xf32>
    %2 = tpu.iota {dimensions = array<i32: 1>} : vector<1x8xi32>
    %cst = arith.constant 0.000000e+00 : f32
    %3 = vector.broadcast %cst : f32 to vector<2x8xf32>
    %c0_i32 = arith.constant 0 : i32
    %4 = vector.broadcast %c0_i32 : i32 to vector<1x8xi32>
    %5 = arith.cmpi eq, %2, %4 : vector<1x8xi32>
    %c0_2 = arith.constant 0 : index
    %c0_3 = arith.constant 0 : index
    %c0_4 = arith.constant 0 : index
    %6 = vector.load %arg2[%c0_2, %c0_3, %c0_4] : memref<8x2x32xf32, #tpu.memory_space<vmem>>, vector<1x2x32xf32>
    %7 = vector.shape_cast %6 : vector<1x2x32xf32> to vector<2x32xf32>
    %8 = arith.mulf %1, %7 : vector<2x32xf32>
    %cst_5 = arith.constant dense<0.000000e+00> : vector<2xf32>
    %9 = vector.multi_reduction <add>, %8, %cst_5 [1] : vector<2x32xf32> to vector<2xf32>
    %10 = vector.shape_cast %9 : vector<2xf32> to vector<2x1xf32>
    %11 = vector.shape_cast %5 : vector<1x8xi1> to vector<1x8xi1>
    %12 = vector.broadcast %11 : vector<1x8xi1> to vector<2x8xi1>
    %13 = vector.shape_cast %10 : vector<2x1xf32> to vector<2x1xf32>
    %14 = vector.broadcast %13 : vector<2x1xf32> to vector<2x8xf32>
    %15 = arith.select %12, %14, %3 : vector<2x8xi1>, vector<2x8xf32>
    %c1_i32 = arith.constant 1 : i32
    %16 = vector.broadcast %c1_i32 : i32 to vector<1x8xi32>
    %17 = arith.cmpi eq, %2, %16 : vector<1x8xi32>
    %c1 = arith.constant 1 : index
    %c0_6 = arith.constant 0 : index
    %c0_7 = arith.constant 0 : index
    %18 = vector.load %arg2[%c1, %c0_6, %c0_7] : memref<8x2x32xf32, #tpu.memory_space<vmem>>, vector<1x2x32xf32>
    %19 = vector.shape_cast %18 : vector<1x2x32xf32> to vector<2x32xf32>
    %20 = arith.mulf %1, %19 : vector<2x32xf32>
    %cst_8 = arith.constant dense<0.000000e+00> : vector<2xf32>
    %21 = vector.multi_reduction <add>, %20, %cst_8 [1] : vector<2x32xf32> to vector<2xf32>
    %22 = vector.shape_cast %21 : vector<2xf32> to vector<2x1xf32>
    %23 = vector.shape_cast %17 : vector<1x8xi1> to vector<1x8xi1>
    %24 = vector.broadcast %23 : vector<1x8xi1> to vector<2x8xi1>
    %25 = vector.shape_cast %22 : vector<2x1xf32> to vector<2x1xf32>
    %26 = vector.broadcast %25 : vector<2x1xf32> to vector<2x8xf32>
    %27 = arith.select %24, %26, %15 : vector<2x8xi1>, vector<2x8xf32>
    %c2_i32 = arith.constant 2 : i32
    %28 = vector.broadcast %c2_i32 : i32 to vector<1x8xi32>
    %29 = arith.cmpi eq, %2, %28 : vector<1x8xi32>
    %c2 = arith.constant 2 : index
    %c0_9 = arith.constant 0 : index
    %c0_10 = arith.constant 0 : index
    %30 = vector.load %arg2[%c2, %c0_9, %c0_10] : memref<8x2x32xf32, #tpu.memory_space<vmem>>, vector<1x2x32xf32>
    %31 = vector.shape_cast %30 : vector<1x2x32xf32> to vector<2x32xf32>
    %32 = arith.mulf %1, %31 : vector<2x32xf32>
    %cst_11 = arith.constant dense<0.000000e+00> : vector<2xf32>
    %33 = vector.multi_reduction <add>, %32, %cst_11 [1] : vector<2x32xf32> to vector<2xf32>
    %34 = vector.shape_cast %33 : vector<2xf32> to vector<2x1xf32>
    %35 = vector.shape_cast %29 : vector<1x8xi1> to vector<1x8xi1>
    %36 = vector.broadcast %35 : vector<1x8xi1> to vector<2x8xi1>
    %37 = vector.shape_cast %34 : vector<2x1xf32> to vector<2x1xf32>
    %38 = vector.broadcast %37 : vector<2x1xf32> to vector<2x8xf32>
    %39 = arith.select %36, %38, %27 : vector<2x8xi1>, vector<2x8xf32>
    %c3_i32 = arith.constant 3 : i32
    %40 = vector.broadcast %c3_i32 : i32 to vector<1x8xi32>
    %41 = arith.cmpi eq, %2, %40 : vector<1x8xi32>
    %c3 = arith.constant 3 : index
    %c0_12 = arith.constant 0 : index
    %c0_13 = arith.constant 0 : index
    %42 = vector.load %arg2[%c3, %c0_12, %c0_13] : memref<8x2x32xf32, #tpu.memory_space<vmem>>, vector<1x2x32xf32>
    %43 = vector.shape_cast %42 : vector<1x2x32xf32> to vector<2x32xf32>
    %44 = arith.mulf %1, %43 : vector<2x32xf32>
    %cst_14 = arith.constant dense<0.000000e+00> : vector<2xf32>
    %45 = vector.multi_reduction <add>, %44, %cst_14 [1] : vector<2x32xf32> to vector<2xf32>
    %46 = vector.shape_cast %45 : vector<2xf32> to vector<2x1xf32>
    %47 = vector.shape_cast %41 : vector<1x8xi1> to vector<1x8xi1>
    %48 = vector.broadcast %47 : vector<1x8xi1> to vector<2x8xi1>
    %49 = vector.shape_cast %46 : vector<2x1xf32> to vector<2x1xf32>
    %50 = vector.broadcast %49 : vector<2x1xf32> to vector<2x8xf32>
    %51 = arith.select %48, %50, %39 : vector<2x8xi1>, vector<2x8xf32>
    %c4_i32 = arith.constant 4 : i32
    %52 = vector.broadcast %c4_i32 : i32 to vector<1x8xi32>
    %53 = arith.cmpi eq, %2, %52 : vector<1x8xi32>
    %c4 = arith.constant 4 : index
    %c0_15 = arith.constant 0 : index
    %c0_16 = arith.constant 0 : index
    %54 = vector.load %arg2[%c4, %c0_15, %c0_16] : memref<8x2x32xf32, #tpu.memory_space<vmem>>, vector<1x2x32xf32>
    %55 = vector.shape_cast %54 : vector<1x2x32xf32> to vector<2x32xf32>
    %56 = arith.mulf %1, %55 : vector<2x32xf32>
    %cst_17 = arith.constant dense<0.000000e+00> : vector<2xf32>
    %57 = vector.multi_reduction <add>, %56, %cst_17 [1] : vector<2x32xf32> to vector<2xf32>
    %58 = vector.shape_cast %57 : vector<2xf32> to vector<2x1xf32>
    %59 = vector.shape_cast %53 : vector<1x8xi1> to vector<1x8xi1>
    %60 = vector.broadcast %59 : vector<1x8xi1> to vector<2x8xi1>
    %61 = vector.shape_cast %58 : vector<2x1xf32> to vector<2x1xf32>
    %62 = vector.broadcast %61 : vector<2x1xf32> to vector<2x8xf32>
    %63 = arith.select %60, %62, %51 : vector<2x8xi1>, vector<2x8xf32>
    %c5_i32 = arith.constant 5 : i32
    %64 = vector.broadcast %c5_i32 : i32 to vector<1x8xi32>
    %65 = arith.cmpi eq, %2, %64 : vector<1x8xi32>
    %c5 = arith.constant 5 : index
    %c0_18 = arith.constant 0 : index
    %c0_19 = arith.constant 0 : index
    %66 = vector.load %arg2[%c5, %c0_18, %c0_19] : memref<8x2x32xf32, #tpu.memory_space<vmem>>, vector<1x2x32xf32>
    %67 = vector.shape_cast %66 : vector<1x2x32xf32> to vector<2x32xf32>
    %68 = arith.mulf %1, %67 : vector<2x32xf32>
    %cst_20 = arith.constant dense<0.000000e+00> : vector<2xf32>
    %69 = vector.multi_reduction <add>, %68, %cst_20 [1] : vector<2x32xf32> to vector<2xf32>
    %70 = vector.shape_cast %69 : vector<2xf32> to vector<2x1xf32>
    %71 = vector.shape_cast %65 : vector<1x8xi1> to vector<1x8xi1>
    %72 = vector.broadcast %71 : vector<1x8xi1> to vector<2x8xi1>
    %73 = vector.shape_cast %70 : vector<2x1xf32> to vector<2x1xf32>
    %74 = vector.broadcast %73 : vector<2x1xf32> to vector<2x8xf32>
    %75 = arith.select %72, %74, %63 : vector<2x8xi1>, vector<2x8xf32>
    %c6_i32 = arith.constant 6 : i32
    %76 = vector.broadcast %c6_i32 : i32 to vector<1x8xi32>
    %77 = arith.cmpi eq, %2, %76 : vector<1x8xi32>
    %c6 = arith.constant 6 : index
    %c0_21 = arith.constant 0 : index
    %c0_22 = arith.constant 0 : index
    %78 = vector.load %arg2[%c6, %c0_21, %c0_22] : memref<8x2x32xf32, #tpu.memory_space<vmem>>, vector<1x2x32xf32>
    %79 = vector.shape_cast %78 : vector<1x2x32xf32> to vector<2x32xf32>
    %80 = arith.mulf %1, %79 : vector<2x32xf32>
    %cst_23 = arith.constant dense<0.000000e+00> : vector<2xf32>
    %81 = vector.multi_reduction <add>, %80, %cst_23 [1] : vector<2x32xf32> to vector<2xf32>
    %82 = vector.shape_cast %81 : vector<2xf32> to vector<2x1xf32>
    %83 = vector.shape_cast %77 : vector<1x8xi1> to vector<1x8xi1>
    %84 = vector.broadcast %83 : vector<1x8xi1> to vector<2x8xi1>
    %85 = vector.shape_cast %82 : vector<2x1xf32> to vector<2x1xf32>
    %86 = vector.broadcast %85 : vector<2x1xf32> to vector<2x8xf32>
    %87 = arith.select %84, %86, %75 : vector<2x8xi1>, vector<2x8xf32>
    %c7_i32 = arith.constant 7 : i32
    %88 = vector.broadcast %c7_i32 : i32 to vector<1x8xi32>
    %89 = arith.cmpi eq, %2, %88 : vector<1x8xi32>
    %c7 = arith.constant 7 : index
    %c0_24 = arith.constant 0 : index
    %c0_25 = arith.constant 0 : index
    %90 = vector.load %arg2[%c7, %c0_24, %c0_25] : memref<8x2x32xf32, #tpu.memory_space<vmem>>, vector<1x2x32xf32>
    %91 = vector.shape_cast %90 : vector<1x2x32xf32> to vector<2x32xf32>
    %92 = arith.mulf %1, %91 : vector<2x32xf32>
    %cst_26 = arith.constant dense<0.000000e+00> : vector<2xf32>
    %93 = vector.multi_reduction <add>, %92, %cst_26 [1] : vector<2x32xf32> to vector<2xf32>
    %94 = vector.shape_cast %93 : vector<2xf32> to vector<2x1xf32>
    %95 = vector.shape_cast %89 : vector<1x8xi1> to vector<1x8xi1>
    %96 = vector.broadcast %95 : vector<1x8xi1> to vector<2x8xi1>
    %97 = vector.shape_cast %94 : vector<2x1xf32> to vector<2x1xf32>
    %98 = vector.broadcast %97 : vector<2x1xf32> to vector<2x8xf32>
    %99 = arith.select %96, %98, %87 : vector<2x8xi1>, vector<2x8xf32>
    %cst_27 = arith.constant dense<0xFF800000> : vector<2xf32>
    %100 = vector.multi_reduction <maximumf>, %99, %cst_27 [1] : vector<2x8xf32> to vector<2xf32>
    %101 = vector.shape_cast %100 : vector<2xf32> to vector<2x1xf32>
    %102 = vector.broadcast %101 : vector<2x1xf32> to vector<2x8xf32>
    %103 = arith.subf %99, %102 : vector<2x8xf32>
    %104 = math.exp %103 : vector<2x8xf32>
    %cst_28 = arith.constant dense<0.000000e+00> : vector<2xf32>
    %105 = vector.multi_reduction <add>, %104, %cst_28 [1] : vector<2x8xf32> to vector<2xf32>
    %106 = vector.shape_cast %105 : vector<2xf32> to vector<2x1xf32>
    %107 = vector.broadcast %106 : vector<2x1xf32> to vector<2x8xf32>
    %108 = arith.divf %104, %107 : vector<2x8xf32>
    %c0_29 = arith.constant 0 : index
    %c0_30 = arith.constant 0 : index
    %c0_31 = arith.constant 0 : index
    %109 = vector.load %arg3[%c0_29, %c0_30, %c0_31] : memref<2x1x8xf32, #tpu.memory_space<vmem>>, vector<2x1x8xf32>
    %110 = vector.shape_cast %109 : vector<2x1x8xf32> to vector<2x8xf32>
    %111 = vector.shape_cast %108 : vector<2x8xf32> to vector<2x1x8xf32>
    tpu.vector_store %arg3[%c0_29, %c0_30, %c0_31], %111 {strides = array<i32>} : memref<2x1x8xf32, #tpu.memory_space<vmem>>, vector<2x1x8xf32>,
    return
  }
  func.func @transform_0(%arg0: i32) -> (i32, i32, i32) {
    %c0_i32 = arith.constant 0 : i32
    %c0_i32_0 = arith.constant 0 : i32
    %c0_i32_1 = arith.constant 0 : i32
    return %c0_i32, %arg0, %c0_i32_0 : i32, i32, i32
  }
  func.func @transform_1(%arg0: i32) -> (i32, i32, i32) {
    %c0_i32 = arith.constant 0 : i32
    %c0_i32_0 = arith.constant 0 : i32
    %c0_i32_1 = arith.constant 0 : i32
    return %c0_i32, %arg0, %c0_i32_0 : i32, i32, i32
  }
  func.func @transform_2(%arg0: i32) -> (i32, i32, i32) {
    %c0_i32 = arith.constant 0 : i32
    %c0_i32_0 = arith.constant 0 : i32
    %c0_i32_1 = arith.constant 0 : i32
    return %arg0, %c0_i32, %c0_i32_0 : i32, i32, i32
  }
}

</mosaic_0001>

<bundles_post_ra>
// kernel: tpu_custom_call.1
= control target key start
LH: loop header
LB: loop body
LE: loop exit
PB: predicated region body
PF: predicated region fallthrough
CT: control target
= control target key end

     0   :  { %7 = vsyncpa [#allocation3], 0  ;;  %s297_s0 = inlined_call_operand.hbm [shape: f32[1,2,32], index: 0, kind: input, shape index: {}]   ;;  %s298_s1 = inlined_call_operand.hbm [shape: f32[8,2,32], index: 1, kind: input, shape index: {}]   ;;  %s299_s2 = inlined_call_operand.hbm [shape: f32[2,1,8], index: 2, kind: output, shape index: {}]  }
   0x1   :  { %8 = vsyncpa [#allocation6], 0 }
   0x2   :  { %9 = vsyncpa [#allocation4], 0  ;;  %s257_s9 = smov [#allocation2]   ;;  %s258_s11 = smov [#allocation5]  }
   0x3   :  { %s16_s10 = sshll.u32 %s257_s9, 4  ;;  %s25_s12 = sshll.u32 %s258_s11, 4  ;;  %s17_s10 = int_to_ptr.vmem [resolvable:$true] %s16_s10  ;;  %s26_s12 = int_to_ptr.vmem [resolvable:$true] %s25_s12 }
   0x4   :  { %s199_s13 = scalar_lea.vmem %s17_s10, 32  ;;  %p204_p1 = scmp.lt.s32.totalorder %s17_s10, %s17_s10 }
   0x5   :  { %p200_p0 = scmp.ne.s32.totalorder %s17_s10, %s199_s13  ;;  %p205_p2 = scmp.lt.s32.totalorder %s199_s13, %s199_s13 }
   0x7   :  { %p206_p3 = por %p205_p2, %p204_p1 }
   0x9   :  { %p207_p4 = pnand %p206_p3, %p200_p0 }
   0xb   :  { %210 = shalt.err (!%p207_p4)
}
   0xc   :  { %19 = dma.hbm_to_vmem [thread:$0]  %s297_s0, 32, %s17_s10, [#allocation3]  }
   0xd   :  { %s219_s16 = scalar_lea.vmem %s26_s12, 256  ;;  %p224_p6 = scmp.lt.s32.totalorder %s26_s12, %s26_s12 }
   0xe   :  { %p220_p5 = scmp.ne.s32.totalorder %s26_s12, %s219_s16  ;;  %p225_p7 = scmp.lt.s32.totalorder %s219_s16, %s219_s16 }
  0x10   :  { %p226_p8 = por %p225_p7, %p224_p6 }
  0x12   :  { %p227_p9 = pnand %p226_p8, %p220_p5 }
  0x14   :  { %230 = shalt.err (!%p227_p9)
}
  0x15   :  { %s259_s17 = smov 32   ;;  %s260_s18 = smov 2  }
  0x16   :  { %31 = dma.hbm_to_vmem [thread:$0]  %s298_s1, 256, %s26_s12, [#allocation6], %s259_s17, %s259_s17, %s260_s18  }
  0x17   :  { %251 = dma.done.wait [#allocation3], 32  }
  0x18   :  { %252 = vsyncadd [#allocation3], 4294967264 }
  0x19   :  { %253 = dma.done.wait [#allocation6], 256  }
  0x1a   :  { %254 = vsyncadd [#allocation6], 4294967040  ;;  %vm44_vm0 = vcmask 254976   ;;  %v38_v0 = vld [vmem:[#allocation2] sm:$0x3]  ;;  %v39_v25 = vlaneseq  ;;  %vm121_vm9 = vcmask 58368  }
  0x1b   :  { %v42_v1 = vld [vmem:[#allocation5] sm:$0x3]  ;;  %v63_v2 = vld [vmem:[#allocation5 + $0x4] sm:$0x3]  ;;  %v53_v5 = vld [vmem:[#allocation5 + $0x2] sm:$0x3] }
  0x1c   :  { %v43_v3 = vmul.f32 %v42_v1, %v38_v0  ;;  %v64_v4 = vmul.f32 %v63_v2, %v38_v0  ;;  %v73_v6 = vld [vmem:[#allocation5 + $0x6] sm:$0x3]  ;;  %v54_v7 = vmul.f32 %v53_v5, %v38_v0  ;;  %v83_v9 = vld [vmem:[#allocation5 + $0x8] sm:$0x3]  ;;  %v93_v10 = vld [vmem:[#allocation5 + $0xa] sm:$0x3] }
  0x1d   :  { %v74_v8 = vmul.f32 %v73_v6, %v38_v0  ;;  %v84_v15 = vmul.f32 %v83_v9, %v38_v0  ;;  %v94_v16 = vmul.f32 %v93_v10, %v38_v0  ;;  %v103_v17 = vld [vmem:[#allocation5 + $0xc] sm:$0x3]  ;;  %v113_v18 = vld [vmem:[#allocation5 + $0xe] sm:$0x3]  ;;  %v40_v26 = vand.u32 127, %v39_v25  ;;  %s262_s0 = smov [#allocation7]  }
  0x1e   :  { %v45_v11 = vsel %vm44_vm0, %v43_v3, 0.0  ;;  %v65_v12 = vsel %vm44_vm0, %v64_v4, 0.0  ;;  %v55_v13 = vsel %vm44_vm0, %v54_v7, 0.0  ;;  %v104_v21 = vmul.f32 %v103_v17, %v38_v0  ;;  %s166_s1 = sshll.u32 %s262_s0, 4  ;;  %s167_s1 = int_to_ptr.vmem [resolvable:$true] %s166_s1 }
  0x1f   :  { %46 = vadd.xlane.f32.xlu0 %v45_v11  ;;  %66 = vadd.xlane.f32.xlu1 %v65_v12  ;;  %v75_v14 = vsel %vm44_vm0, %v74_v8, 0.0  ;;  %v85_v19 = vsel %vm44_vm0, %v84_v15, 0.0  ;;  %v95_v20 = vsel %vm44_vm0, %v94_v16, 0.0  ;;  %v114_v22 = vmul.f32 %v113_v18, %v38_v0  ;;  %s231_s21 = scalar_lea.vmem %s167_s1, 32  ;;  %p236_p11 = scmp.lt.s32.totalorder %s167_s1, %s167_s1 }
  0x20   :  { %v105_v23 = vsel %vm44_vm0, %v104_v21, 0.0  ;;  %vm41_vm1 = vcmp.eq.s32.totalorder %v40_v26, 0  ;;  %vm51_vm2 = vcmp.eq.s32.totalorder %v40_v26, 1  ;;  %vm61_vm3 = vcmp.eq.s32.totalorder %v40_v26, 2  ;;  %p232_p10 = scmp.ne.s32.totalorder %s167_s1, %s231_s21  ;;  %p237_p12 = scmp.lt.s32.totalorder %s231_s21, %s231_s21 }
  0x21   :  { %v115_v24 = vsel %vm44_vm0, %v114_v22, 0.0  ;;  %vm71_vm4 = vcmp.eq.s32.totalorder %v40_v26, 3  ;;  %vm81_vm5 = vcmp.eq.s32.totalorder %v40_v26, 4  ;;  %vm91_vm6 = vcmp.eq.s32.totalorder %v40_v26, 5 }
  0x22   :  { %vm101_vm7 = vcmp.eq.s32.totalorder %v40_v26, 6  ;;  %vm111_vm8 = vcmp.eq.s32.totalorder %v40_v26, 7  ;;  %v261_v50 = vmov 1966171168   ;;  %v138_v53 = vshrl.u32 %v39_v25, 7  ;;  %p238_p13 = por %p237_p12, %p236_p11 }
  0x23   :  { %56 = vadd.xlane.f32.xlu0 %v55_v13  ;;  %76 = vadd.xlane.f32.xlu1 %v75_v14  ;;  %v135_v51 = vunpack.c.l.s4 %v261_v50  ;;  %vm158_vm10 = vcmask 57344  }
  0x24   :  { %p239_p0 = pnand %p238_p13, %p232_p10 }
  0x25   :  { %v136_v52 = vunpack.c.0.s8 %v135_v51 }
  0x27   :  { %86 = vadd.xlane.f32.xlu0 %v85_v19  ;;  %96 = vadd.xlane.f32.xlu1 %v95_v20  ;;  %v139_v54 = vsub.s32 %v136_v52, %v138_v53 }
  0x2b   :  { %106 = vadd.xlane.f32.xlu0 %v105_v23  ;;  %116 = vadd.xlane.f32.xlu1 %v115_v24 }
  0xa8   :  { %v47_v27 = vpop.xlane.xlu0 %46  ;;  %v67_v28 = vpop.xlane.xlu1 %66 }
  0xa9   :  { %v50_v29 = vsel %vm41_vm1, %v47_v27, 0.0 }
  0xac   :  { %v57_v30 = vpop.xlane.xlu0 %56  ;;  %v77_v31 = vpop.xlane.xlu1 %76 }
  0xad   :  { %v60_v32 = vsel %vm51_vm2, %v57_v30, %v50_v29 }
  0xae   :  { %v70_v33 = vsel %vm61_vm3, %v67_v28, %v60_v32 }
  0xaf   :  { %v80_v34 = vsel %vm71_vm4, %v77_v31, %v70_v33 }
  0xb0   :  { %v87_v35 = vpop.xlane.xlu0 %86  ;;  %v97_v36 = vpop.xlane.xlu1 %96 }
  0xb1   :  { %v90_v37 = vsel %vm81_vm5, %v87_v35, %v80_v34 }
  0xb2   :  { %v100_v38 = vsel %vm91_vm6, %v97_v36, %v90_v37 }
  0xb4   :  { %v107_v39 = vpop.xlane.xlu0 %106  ;;  %v117_v40 = vpop.xlane.xlu1 %116 }
  0xb5   :  { %v110_v41 = vsel %vm101_vm7, %v107_v39, %v100_v38 }
  0xb6   :  { %v120_v42 = vsel %vm111_vm8, %v117_v40, %v110_v41 }
  0xb7   :  { %v122_v43 = vsel %vm121_vm9, %v120_v42, -inf }
  0xb8   :  { %123 = vmax.xlane.f32.xlu0 %v122_v43 }
 0x141   :  { %v124_v44 = vpop.xlane.xlu0 %123 }
 0x142   :  { %v125_v45 = vsub.f32 %v120_v42, %v124_v44 }
 0x144   :  { %v126_v46 = vmul.f32 1.442695, %v125_v45 }
 0x146   :  { %187 = vpow2.f32 %v126_v46 }
 0x153   :  { %v188_v47 = vpop.eup %187 }
 0x154   :  { %v128_v48 = vsel %vm121_vm9, %v188_v47, 0.0 }
 0x155   :  { %129 = vadd.xlane.f32.xlu1 %v128_v48 }
 0x1de   :  { %v130_v49 = vpop.xlane.xlu1 %129 }
 0x1df   :  { %189 = vrcp.f32 %v130_v49 }
 0x1ec   :  { %v190_v55 = vpop.eup %189 }
 0x1ed   :  { %v132_v56 = vmul.f32 %v190_v55, %v188_v47 }
 0x1ef   :  { %v140_v57 = vrot.slane %v132_v56, %v139_v54 }
 0x1f1   :  { %v141_v58 = vcombine.high %v140_v57, %v140_v57  ;;  %v148_v59 = vrot.slane %v140_v57, %v139_v54 }
 0x1f3   :  { %v155_v60 = vrot.slane %v141_v58, %v139_v54  ;;  %159 = vst.msk [vmem:[#allocation7] sm:$0x1] %vm158_vm10, %v148_v59 }
 0x1f5   :  { %160 = vst.msk [vmem:[#allocation7 + $0x1] sm:$0x1] %vm158_vm10, %v155_v60 }
 0x1f6   :  { %242 = shalt.err (!%p239_p0)
}
 0x1f7   :  { %s263_s22 = smov 16   ;;  %s264_s23 = smov 1  }
 0x1f8   :  { %172 = dma.vmem_to_hbm [thread:$0]  %s167_s1, 32, %s299_s2, [#allocation4], %s263_s22, %s263_s22, %s264_s23  }
 0x1f9   :  { %255 = dma.done.wait [#allocation4], 32  }
 0x1fa   :  { %256 = vsyncadd [#allocation4], 4294967264 }
 0x1fb   :  { %176 = vsyncpa [#allocation3], 1 }
 0x1fc   :  { %177 = vsyncpa [#allocation6], 1 }
 0x1fd   :  { %178 = vsyncpa [#allocation4], 1 }

// kernel: tpu_custom_call.1
= control target key start
LH: loop header
LB: loop body
LE: loop exit
PB: predicated region body
PF: predicated region fallthrough
CT: control target
= control target key end

     0   :  { %7 = vsyncpa [#allocation3], 0  ;;  %s297_s0 = inlined_call_operand.hbm [shape: f32[1,2,32], index: 0, kind: input, shape index: {}]   ;;  %s298_s1 = inlined_call_operand.hbm [shape: f32[8,2,32], index: 1, kind: input, shape index: {}]   ;;  %s299_s2 = inlined_call_operand.hbm [shape: f32[2,1,8], index: 2, kind: output, shape index: {}]  }
   0x1   :  { %8 = vsyncpa [#allocation6], 0 }
   0x2   :  { %9 = vsyncpa [#allocation4], 0  ;;  %s257_s9 = smov [#allocation2]   ;;  %s258_s11 = smov [#allocation5]  }
   0x3   :  { %s16_s10 = sshll.u32 %s257_s9, 4  ;;  %s25_s12 = sshll.u32 %s258_s11, 4  ;;  %s17_s10 = int_to_ptr.vmem [resolvable:$true] %s16_s10  ;;  %s26_s12 = int_to_ptr.vmem [resolvable:$true] %s25_s12 }
   0x4   :  { %s199_s13 = scalar_lea.vmem %s17_s10, 32  ;;  %p204_p1 = scmp.lt.s32.totalorder %s17_s10, %s17_s10 }
   0x5   :  { %p200_p0 = scmp.ne.s32.totalorder %s17_s10, %s199_s13  ;;  %p205_p2 = scmp.lt.s32.totalorder %s199_s13, %s199_s13 }
   0x7   :  { %p206_p3 = por %p205_p2, %p204_p1 }
   0x9   :  { %p207_p4 = pnand %p206_p3, %p200_p0 }
   0xb   :  { %210 = shalt.err (!%p207_p4)
}
   0xc   :  { %19 = dma.hbm_to_vmem [thread:$0]  %s297_s0, 32, %s17_s10, [#allocation3]  }
   0xd   :  { %s219_s16 = scalar_lea.vmem %s26_s12, 256  ;;  %p224_p6 = scmp.lt.s32.totalorder %s26_s12, %s26_s12 }
   0xe   :  { %p220_p5 = scmp.ne.s32.totalorder %s26_s12, %s219_s16  ;;  %p225_p7 = scmp.lt.s32.totalorder %s219_s16, %s219_s16 }
  0x10   :  { %p226_p8 = por %p225_p7, %p224_p6 }
  0x12   :  { %p227_p9 = pnand %p226_p8, %p220_p5 }
  0x14   :  { %230 = shalt.err (!%p227_p9)
}
  0x15   :  { %s259_s17 = smov 32   ;;  %s260_s18 = smov 2  }
  0x16   :  { %31 = dma.hbm_to_vmem [thread:$0]  %s298_s1, 256, %s26_s12, [#allocation6], %s259_s17, %s259_s17, %s260_s18  }
  0x17   :  { %251 = dma.done.wait [#allocation3], 32  }
  0x18   :  { %252 = vsyncadd [#allocation3], 4294967264 }
  0x19   :  { %253 = dma.done.wait [#allocation6], 256  }
  0x1a   :  { %254 = vsyncadd [#allocation6], 4294967040  ;;  %vm44_vm0 = vcmask 254976   ;;  %v38_v0 = vld [vmem:[#allocation2] sm:$0x3]  ;;  %v39_v25 = vlaneseq  ;;  %vm121_vm9 = vcmask 58368  }
  0x1b   :  { %v42_v1 = vld [vmem:[#allocation5] sm:$0x3]  ;;  %v63_v2 = vld [vmem:[#allocation5 + $0x4] sm:$0x3]  ;;  %v53_v5 = vld [vmem:[#allocation5 + $0x2] sm:$0x3] }
  0x1c   :  { %v43_v3 = vmul.f32 %v42_v1, %v38_v0  ;;  %v64_v4 = vmul.f32 %v63_v2, %v38_v0  ;;  %v73_v6 = vld [vmem:[#allocation5 + $0x6] sm:$0x3]  ;;  %v54_v7 = vmul.f32 %v53_v5, %v38_v0  ;;  %v83_v9 = vld [vmem:[#allocation5 + $0x8] sm:$0x3]  ;;  %v93_v10 = vld [vmem:[#allocation5 + $0xa] sm:$0x3] }
  0x1d   :  { %v74_v8 = vmul.f32 %v73_v6, %v38_v0  ;;  %v84_v15 = vmul.f32 %v83_v9, %v38_v0  ;;  %v94_v16 = vmul.f32 %v93_v10, %v38_v0  ;;  %v103_v17 = vld [vmem:[#allocation5 + $0xc] sm:$0x3]  ;;  %v113_v18 = vld [vmem:[#allocation5 + $0xe] sm:$0x3]  ;;  %v40_v26 = vand.u32 127, %v39_v25  ;;  %s262_s0 = smov [#allocation7]  }
  0x1e   :  { %v45_v11 = vsel %vm44_vm0, %v43_v3, 0.0  ;;  %v65_v12 = vsel %vm44_vm0, %v64_v4, 0.0  ;;  %v55_v13 = vsel %vm44_vm0, %v54_v7, 0.0  ;;  %v104_v21 = vmul.f32 %v103_v17, %v38_v0  ;;  %s166_s1 = sshll.u32 %s262_s0, 4  ;;  %s167_s1 = int_to_ptr.vmem [resolvable:$true] %s166_s1 }
  0x1f   :  { %46 = vadd.xlane.f32.xlu0 %v45_v11  ;;  %66 = vadd.xlane.f32.xlu1 %v65_v12  ;;  %v75_v14 = vsel %vm44_vm0, %v74_v8, 0.0  ;;  %v85_v19 = vsel %vm44_vm0, %v84_v15, 0.0  ;;  %v95_v20 = vsel %vm44_vm0, %v94_v16, 0.0  ;;  %v114_v22 = vmul.f32 %v113_v18, %v38_v0  ;;  %s231_s21 = scalar_lea.vmem %s167_s1, 32  ;;  %p236_p11 = scmp.lt.s32.totalorder %s167_s1, %s167_s1 }
  0x20   :  { %v105_v23 = vsel %vm44_vm0, %v104_v21, 0.0  ;;  %vm41_vm1 = vcmp.eq.s32.totalorder %v40_v26, 0  ;;  %vm51_vm2 = vcmp.eq.s32.totalorder %v40_v26, 1  ;;  %vm61_vm3 = vcmp.eq.s32.totalorder %v40_v26, 2  ;;  %p232_p10 = scmp.ne.s32.totalorder %s167_s1, %s231_s21  ;;  %p237_p12 = scmp.lt.s32.totalorder %s231_s21, %s231_s21 }
  0x21   :  { %v115_v24 = vsel %vm44_vm0, %v114_v22, 0.0  ;;  %vm71_vm4 = vcmp.eq.s32.totalorder %v40_v26, 3  ;;  %vm81_vm5 = vcmp.eq.s32.totalorder %v40_v26, 4  ;;  %vm91_vm6 = vcmp.eq.s32.totalorder %v40_v26, 5 }
  0x22   :  { %vm101_vm7 = vcmp.eq.s32.totalorder %v40_v26, 6  ;;  %vm111_vm8 = vcmp.eq.s32.totalorder %v40_v26, 7  ;;  %v261_v50 = vmov 1966171168   ;;  %v138_v53 = vshrl.u32 %v39_v25, 7  ;;  %p238_p13 = por %p237_p12, %p236_p11 }
  0x23   :  { %56 = vadd.xlane.f32.xlu0 %v55_v13  ;;  %76 = vadd.xlane.f32.xlu1 %v75_v14  ;;  %v135_v51 = vunpack.c.l.s4 %v261_v50  ;;  %vm158_vm10 = vcmask 57344  }
  0x24   :  { %p239_p0 = pnand %p238_p13, %p232_p10 }
  0x25   :  { %v136_v52 = vunpack.c.0.s8 %v135_v51 }
  0x27   :  { %86 = vadd.xlane.f32.xlu0 %v85_v19  ;;  %96 = vadd.xlane.f32.xlu1 %v95_v20  ;;  %v139_v54 = vsub.s32 %v136_v52, %v138_v53 }
  0x2b   :  { %106 = vadd.xlane.f32.xlu0 %v105_v23  ;;  %116 = vadd.xlane.f32.xlu1 %v115_v24 }
  0xa8   :  { %v47_v27 = vpop.xlane.xlu0 %46  ;;  %v67_v28 = vpop.xlane.xlu1 %66 }
  0xa9   :  { %v50_v29 = vsel %vm41_vm1, %v47_v27, 0.0 }
  0xac   :  { %v57_v30 = vpop.xlane.xlu0 %56  ;;  %v77_v31 = vpop.xlane.xlu1 %76 }
  0xad   :  { %v60_v32 = vsel %vm51_vm2, %v57_v30, %v50_v29 }
  0xae   :  { %v70_v33 = vsel %vm61_vm3, %v67_v28, %v60_v32 }
  0xaf   :  { %v80_v34 = vsel %vm71_vm4, %v77_v31, %v70_v33 }
  0xb0   :  { %v87_v35 = vpop.xlane.xlu0 %86  ;;  %v97_v36 = vpop.xlane.xlu1 %96 }
  0xb1   :  { %v90_v37 = vsel %vm81_vm5, %v87_v35, %v80_v34 }
  0xb2   :  { %v100_v38 = vsel %vm91_vm6, %v97_v36, %v90_v37 }
  0xb4   :  { %v107_v39 = vpop.xlane.xlu0 %106  ;;  %v117_v40 = vpop.xlane.xlu1 %116 }
  0xb5   :  { %v110_v41 = vsel %vm101_vm7, %v107_v39, %v100_v38 }
  0xb6   :  { %v120_v42 = vsel %vm111_vm8, %v117_v40, %v110_v41 }
  0xb7   :  { %v122_v43 = vsel %vm121_vm9, %v120_v42, -inf }
  0xb8   :  { %123 = vmax.xlane.f32.xlu0 %v122_v43 }
 0x141   :  { %v124_v44 = vpop.xlane.xlu0 %123 }
 0x142   :  { %v125_v45 = vsub.f32 %v120_v42, %v124_v44 }
 0x144   :  { %v126_v46 = vmul.f32 1.442695, %v125_v45 }
 0x146   :  { %187 = vpow2.f32 %v126_v46 }
 0x153   :  { %v188_v47 = vpop.eup %187 }
 0x154   :  { %v128_v48 = vsel %vm121_vm9, %v188_v47, 0.0 }
 0x155   :  { %129 = vadd.xlane.f32.xlu1 %v128_v48 }
 0x1de   :  { %v130_v49 = vpop.xlane.xlu1 %129 }
 0x1df   :  { %189 = vrcp.f32 %v130_v49 }
 0x1ec   :  { %v190_v55 = vpop.eup %189 }
 0x1ed   :  { %v132_v56 = vmul.f32 %v190_v55, %v188_v47 }
 0x1ef   :  { %v140_v57 = vrot.slane %v132_v56, %v139_v54 }
 0x1f1   :  { %v141_v58 = vcombine.high %v140_v57, %v140_v57  ;;  %v148_v59 = vrot.slane %v140_v57, %v139_v54 }
 0x1f3   :  { %v155_v60 = vrot.slane %v141_v58, %v139_v54  ;;  %159 = vst.msk [vmem:[#allocation7] sm:$0x1] %vm158_vm10, %v148_v59 }
 0x1f5   :  { %160 = vst.msk [vmem:[#allocation7 + $0x1] sm:$0x1] %vm158_vm10, %v155_v60 }
 0x1f6   :  { %242 = shalt.err (!%p239_p0)
}
 0x1f7   :  { %s263_s22 = smov 16   ;;  %s264_s23 = smov 1  }
 0x1f8   :  { %172 = dma.vmem_to_hbm [thread:$0]  %s167_s1, 32, %s299_s2, [#allocation4], %s263_s22, %s263_s22, %s264_s23  }
 0x1f9   :  { %255 = dma.done.wait [#allocation4], 32  }
 0x1fa   :  { %256 = vsyncadd [#allocation4], 4294967264 }
 0x1fb   :  { %176 = vsyncpa [#allocation3], 1 }
 0x1fc   :  { %177 = vsyncpa [#allocation6], 1 }
 0x1fd   :  { %178 = vsyncpa [#allocation4], 1 }

</bundles_post_ra>
